<compile_context>
chip_gen: v7x
topology: tpu7x:2x2x1
jax: 0.10.0
libtpu: 0.0.40
codegen_flags: <defaults>
</compile_context>

<pallas_src>
import functools

import jax
import jax.numpy as jnp
import numpy as np
from jax.experimental import pallas as pl
from jax.experimental.pallas import tpu as pltpu

_D = 7            # pose = 3 position + 4 quaternion components
_POS = 3
_LANE = 128
_MAX_BLOCK_ROWS = 3584            # multiple of 56 (f32) and 112 (bf16); 1.75 MiB f32/tile
_PALLAS_MIN_ELEMS = 1 << 17       # kernel only pays off at HBM-streaming sizes
_VMEM_LIMIT_BYTES = 32 * 1024 * 1024


def _pose_loss_kernel(pred_ref, target_ref, w_ref, out_ref, acc_ref, *,
                      total_rows, block_rows, ragged):
    """Accumulate squared error over lane-dense tiles; weighted reduce at the last step."""
    t = pl.program_id(0)

    @pl.when(t == 0)
    def _init():
        acc_ref[...] = jnp.zeros_like(acc_ref)

    # Upcast at the compute, not in the wrapper (HBM traffic stays in the input dtype).
    d = pred_ref[...].astype(jnp.float32) - target_ref[...].astype(jnp.float32)
    sq = d * d
    if ragged:
        # The last block is partial: rows >= (total_rows - t*block_rows) of the VMEM
        # window hold stale data and must not contribute.  For every non-last step the
        # mask is an identity (limit >= block_rows).
        row = jax.lax.broadcasted_iota(jnp.int32, sq.shape, 0)
        sq = jnp.where(row < (total_rows - t * block_rows), sq, 0.0)
    acc_ref[...] += sq            # hot loop: pure VPU work, no weight multiply

    @pl.when(t == pl.num_programs(0) - 1)
    def _finalize():
        # Single cross-lane (XLU) reduction for the whole pass.  The per-element weight
        # is tile-invariant (block_rows*128 is a multiple of 7) and its block index is
        # constant, so w_ref was DMA'd exactly once and never touched in the hot loop.
        out_ref[0, 0] = jnp.sum(acc_ref[...] * w_ref[...])


def pose_loss_ref(pred, target):
    """Pure-JAX reference (and the fast path for small batches). Computes in f32."""
    p = pred.astype(jnp.float32)
    t = target.astype(jnp.float32)
    pos = jnp.mean((p[:, :_POS] - t[:, :_POS]) ** 2)
    quat = jnp.mean((p[:, _POS:] - t[:, _POS:]) ** 2)
    return pos + quat


def pose_loss(pred: jax.Array, target: jax.Array, *, use_pallas=None,
              block_rows=None) -> jax.Array:
    """MSE(pred[:, :3], target[:, :3]) + MSE(pred[:, 3:], target[:, 3:])."""
    assert pred.shape == target.shape and pred.ndim == 2 and pred.shape[1] == _D
    assert pred.dtype == target.dtype, (pred.dtype, target.dtype)
    b = pred.shape[0]
    flat_len = b * _D

    if use_pallas is None:
        use_pallas = flat_len >= _PALLAS_MIN_ELEMS

    rows = flat_len // _LANE          # complete 128-lane rows
    if not use_pallas or rows == 0:
        return pose_loss_ref(pred, target)

    main_len = rows * _LANE
    tail_len = flat_len - main_len    # < 128 leftover elements -> plain JAX below

    # Sublane quantum depends on dtype packing (8 for f32, 16 for bf16, ...).  block_rows
    # is a multiple of 7*sublane so (a) the BlockSpec is (8,128)-aligned and (b) every
    # tile starts at a flat index == 0 (mod 7), making the per-element weight pattern
    # identical across tiles and therefore deferrable to the finalize step.
    itemsize = jnp.dtype(pred.dtype).itemsize
    period_rows = _D * max(8, 32 // itemsize)
    if block_rows is None:
        block_rows = min(_MAX_BLOCK_ROWS, period_rows * pl.cdiv(rows, period_rows))
    assert block_rows % period_rows == 0, (block_rows, period_rows)

    n_tiles = pl.cdiv(rows, block_rows)
    ragged = (rows % block_rows) != 0

    def lane_view(x):
        flat = x.reshape(-1)                   # free bitcast reshape
        if tail_len:
            # Prefix slice only when B*7 is not a multiple of 128; allow_input_fusion
            # lets XLA fuse it into the kernel's input fetch instead of materializing.
            flat = flat[:main_len]
        return flat.reshape(rows, _LANE)       # zero-copy when no slice was needed

    pred_rows = lane_view(pred)
    target_rows = lane_view(target)

    # Loop-invariant per-element weight tile: 1/3 for position components, 1/4 for
    # quaternion components.  Consumed only in the finalize branch.
    comp = (np.arange(block_rows * _LANE, dtype=np.int64) % _D).reshape(block_rows, _LANE)
    w_tile = jnp.asarray(np.where(comp < _POS, 1.0 / _POS, 1.0 / (_D - _POS)),
                         dtype=jnp.float32)

    kernel = functools.partial(_pose_loss_kernel, total_rows=rows,
                               block_rows=block_rows, ragged=ragged)

    data_spec = pl.BlockSpec((block_rows, _LANE), lambda t: (t, 0))

    main_sum = pl.pallas_call(
        kernel,
        out_shape=jax.ShapeDtypeStruct((1, 1), jnp.float32),
        grid=(n_tiles,),
        in_specs=[
            data_spec,                                                 # pred rows
            data_spec,                                                 # target rows
            pl.BlockSpec((block_rows, _LANE), lambda t: (0, 0)),       # weight: fetched once
        ],
        out_specs=pl.BlockSpec((1, 1), lambda t: (0, 0), memory_space=pltpu.SMEM),
        scratch_shapes=[pltpu.VMEM((block_rows, _LANE), jnp.float32)],
        compiler_params=pltpu.CompilerParams(
            dimension_semantics=("arbitrary",),      # tile axis carries the accumulator
            vmem_limit_bytes=_VMEM_LIMIT_BYTES,
            allow_input_fusion=[True, True, False],  # fold the prefix slice into the fetch
        ),
    )(pred_rows, target_rows, w_tile)[0, 0]

    if tail_len:
        idx = np.arange(main_len, flat_len)
        w_tail = jnp.asarray(np.where(idx % _D < _POS, 1.0 / _POS, 1.0 / (_D - _POS)),
                             dtype=jnp.float32)
        dt = (pred.reshape(-1)[main_len:].astype(jnp.float32)
              - target.reshape(-1)[main_len:].astype(jnp.float32))
        main_sum = main_sum + jnp.sum(w_tail * dt * dt)

    return main_sum / b


if __name__ == "__main__":
    key = jax.random.PRNGKey(0)
    k1, k2, k3, k4 = jax.random.split(key, 4)

    # Small shape matching the PyTorch [N, 7] pose convention (auto path: pure JAX).
    pred_s = jax.random.normal(k1, (8, _D), dtype=jnp.float32)
    targ_s = jax.random.normal(k2, (8, _D), dtype=jnp.float32)
    loss_s = pose_loss(pred_s, targ_s)
    assert jnp.allclose(loss_s, pose_loss_ref(pred_s, targ_s), rtol=1e-5, atol=1e-6)

    # Lane-aligned batch: 2048*7 = 14336 = 112*128 -> fully zero-copy view, one tile.
    B1 = 2048
    p1 = jax.random.normal(k3, (B1, _D), dtype=jnp.float32)
    t1 = jax.random.normal(k4, (B1, _D), dtype=jnp.float32)
    l1 = pose_loss(p1, t1, use_pallas=True)
    jax.block_until_ready(l1)
    r1 = pose_loss_ref(p1, t1)
    assert jnp.allclose(l1, r1, rtol=1e-4, atol=1e-6), (l1, r1)

    # Ragged batch: multi-tile accumulator, masked partial last block, tiny JAX tail.
    B2 = 3000
    k5, k6 = jax.random.split(k4)
    p2 = jax.random.normal(k5, (B2, _D), dtype=jnp.float32)
    t2 = jax.random.normal(k6, (B2, _D), dtype=jnp.float32)
    l2 = pose_loss(p2, t2, use_pallas=True, block_rows=56)
    jax.block_until_ready(l2)
    r2 = pose_loss_ref(p2, t2)
    assert jnp.allclose(l2, r2, rtol=1e-4, atol=1e-6), (l2, r2)

    # bf16 inputs exercise the wider sublane quantum (block_rows multiple of 112).
    p3 = p1.astype(jnp.bfloat16)
    t3 = t1.astype(jnp.bfloat16)
    l3 = pose_loss(p3, t3, use_pallas=True)
    jax.block_until_ready(l3)
    r3 = pose_loss_ref(p3, t3)
    assert jnp.allclose(l3, r3, rtol=1e-3, atol=1e-4), (l3, r3)

    print("KERNEL_OK")
</pallas_src>

<mosaic_0001>
module attributes {stable_mosaic.version = 11 : i64} {
  func.func @_pose_loss_kernel(%arg0: i32, %arg1: memref<112x128xf32, #tpu.memory_space<vmem>>, %arg2: memref<112x128xf32, #tpu.memory_space<vmem>>, %arg3: memref<112x128xf32, #tpu.memory_space<vmem>>, %arg4: memref<1x1xf32, #tpu.memory_space<smem>>, %arg5: memref<112x128xf32, #tpu.memory_space<vmem>>) attributes {dimension_semantics = [#tpu.dimension_semantics<arbitrary>], iteration_bounds = array<i64: 1>, scalar_prefetch = 0 : i64, scratch_operands = 1 : i64, tpu.core_type = #tpu.core_type<tc>, window_params = [{transform_indices = @transform_0, window_bounds = array<i64: 112, 128>}, {transform_indices = @transform_1, window_bounds = array<i64: 112, 128>}, {pipeline_mode = #tpu.pipeline_mode<synchronous>, transform_indices = @transform_2, window_bounds = array<i64: 112, 128>}, {transform_indices = @transform_3, window_bounds = array<i64: 1, 1>}]} {
    %c0_i32 = arith.constant 0 : i32
    %0 = arith.cmpi eq, %arg0, %c0_i32 : i32
    %1 = arith.extui %0 : i1 to i32
    %c0_i32_0 = arith.constant 0 : i32
    %2 = arith.cmpi ne, %1, %c0_i32_0 : i32
    scf.if %2 {
      %cst = arith.constant 0.000000e+00 : f32
      %13 = vector.broadcast %cst : f32 to vector<112x128xf32>
      %c0_10 = arith.constant 0 : index
      %c0_11 = arith.constant 0 : index
      %14 = vector.load %arg5[%c0_10, %c0_11] : memref<112x128xf32, #tpu.memory_space<vmem>>, vector<112x128xf32>
      tpu.vector_store %arg5[%c0_10, %c0_11], %13 {strides = array<i32>} : memref<112x128xf32, #tpu.memory_space<vmem>>, vector<112x128xf32>,
    } else {
    }
    %c0 = arith.constant 0 : index
    %c0_1 = arith.constant 0 : index
    %3 = vector.load %arg1[%c0, %c0_1] : memref<112x128xf32, #tpu.memory_space<vmem>>, vector<112x128xf32>
    %c0_2 = arith.constant 0 : index
    %c0_3 = arith.constant 0 : index
    %4 = vector.load %arg2[%c0_2, %c0_3] : memref<112x128xf32, #tpu.memory_space<vmem>>, vector<112x128xf32>
    %5 = arith.subf %3, %4 : vector<112x128xf32>
    %6 = arith.mulf %5, %5 : vector<112x128xf32>
    %c0_4 = arith.constant 0 : index
    %c0_5 = arith.constant 0 : index
    %7 = vector.load %arg5[%c0_4, %c0_5] : memref<112x128xf32, #tpu.memory_space<vmem>>, vector<112x128xf32>
    %8 = arith.addf %7, %6 : vector<112x128xf32>
    %c0_6 = arith.constant 0 : index
    %c0_7 = arith.constant 0 : index
    %9 = vector.load %arg5[%c0_6, %c0_7] : memref<112x128xf32, #tpu.memory_space<vmem>>, vector<112x128xf32>
    tpu.vector_store %arg5[%c0_6, %c0_7], %8 {strides = array<i32>} : memref<112x128xf32, #tpu.memory_space<vmem>>, vector<112x128xf32>,
    %c0_i32_8 = arith.constant 0 : i32
    %10 = arith.cmpi eq, %arg0, %c0_i32_8 : i32
    %11 = arith.extui %10 : i1 to i32
    %c0_i32_9 = arith.constant 0 : i32
    %12 = arith.cmpi ne, %11, %c0_i32_9 : i32
    scf.if %12 {
      %c0_10 = arith.constant 0 : index
      %c0_11 = arith.constant 0 : index
      %13 = vector.load %arg5[%c0_10, %c0_11] : memref<112x128xf32, #tpu.memory_space<vmem>>, vector<112x128xf32>
      %c0_12 = arith.constant 0 : index
      %c0_13 = arith.constant 0 : index
      %14 = vector.load %arg3[%c0_12, %c0_13] : memref<112x128xf32, #tpu.memory_space<vmem>>, vector<112x128xf32>
      %15 = arith.mulf %13, %14 : vector<112x128xf32>
      %16 = vector.shape_cast %15 : vector<112x128xf32> to vector<1x112x128xf32>
      %cst = arith.constant dense<0.000000e+00> : vector<1xf32>
      %17 = vector.multi_reduction <add>, %16, %cst [1, 2] : vector<1x112x128xf32> to vector<1xf32>
      %18 = vector.shape_cast %17 : vector<1xf32> to vector<1x1x1xf32>
      %19 = vector.extract %18[0, 0, 0] : f32 from vector<1x1x1xf32>
      %c0_14 = arith.constant 0 : index
      %c0_15 = arith.constant 0 : index
      %20 = memref.load %arg4[%c0_14, %c0_15] : memref<1x1xf32, #tpu.memory_space<smem>>
      memref.store %19, %arg4[%c0_14, %c0_15] : memref<1x1xf32, #tpu.memory_space<smem>>
    } else {
    }
    return
  }
  func.func @transform_0(%arg0: i32) -> (i32, i32) {
    %c0_i32 = arith.constant 0 : i32
    %c0_i32_0 = arith.constant 0 : i32
    return %arg0, %c0_i32 : i32, i32
  }
  func.func @transform_1(%arg0: i32) -> (i32, i32) {
    %c0_i32 = arith.constant 0 : i32
    %c0_i32_0 = arith.constant 0 : i32
    return %arg0, %c0_i32 : i32, i32
  }
  func.func @transform_2(%arg0: i32) -> (i32, i32) {
    %c0_i32 = arith.constant 0 : i32
    %c0_i32_0 = arith.constant 0 : i32
    %c0_i32_1 = arith.constant 0 : i32
    return %c0_i32, %c0_i32_0 : i32, i32
  }
  func.func @transform_3(%arg0: i32) -> (i32, i32) {
    %c0_i32 = arith.constant 0 : i32
    %c0_i32_0 = arith.constant 0 : i32
    %c0_i32_1 = arith.constant 0 : i32
    return %c0_i32, %c0_i32_0 : i32, i32
  }
}

</mosaic_0001>

<bundles_post_ra>
// kernel: tpu_custom_call.1
= control target key start
LH: loop header
LB: loop body
LE: loop exit
PB: predicated region body
PF: predicated region fallthrough
CT: control target
= control target key end

     0   :  { %8 = vsyncpa [#allocation4], 0  ;;  %s436_s0 = inlined_call_operand.hbm [shape: f32[112,128], index: 0, kind: input, shape index: {}]   ;;  %s437_s1 = inlined_call_operand.hbm [shape: f32[112,128], index: 1, kind: input, shape index: {}]   ;;  %s438_s2 = inlined_call_operand.hbm [shape: f32[112,128], index: 2, kind: input, shape index: {}]   ;;  %s439_s3 = inlined_call_operand.hbm [shape: f32[1,1], index: 3, kind: output, shape index: {}]  }
   0x1   :  { %9 = vsyncpa [#allocation7], 0 }
   0x2   :  { %10 = vsyncpa [#allocation5], 0  ;;  %s346_s12 = smov [#allocation6]   ;;  %s347_s14 = smov [#allocation3]  }
   0x3   :  { %s28_s13 = sshll.u32 %s346_s12, 4  ;;  %s16_s15 = sshll.u32 %s347_s14, 4  ;;  %s29_s13 = int_to_ptr.vmem [resolvable:$true] %s28_s13  ;;  %s372_s15 = int_to_ptr.vmem [resolvable:$true] %s16_s15 }
   0x4   :  { %s264_s18 = scalar_lea.hbm %s437_s1, 1792 }
   0x5   :  { %p265_p0 = scmp.ne.s32.totalorder %s437_s1, %s264_s18  ;;  %p268_p1 = scmp.lt.u32.totalorder %s264_s18, %s437_s1 }
   0x7   :  { %p270_p2 = pnand %p268_p1, %p265_p0 }
   0x9   :  { %273 = shalt.err (!%p270_p2)
}
   0xa   :  { %s274_s23 = scalar_lea.vmem %s29_s13, 1792  ;;  %p279_p4 = scmp.lt.s32.totalorder %s29_s13, %s29_s13 }
   0xb   :  { %p275_p3 = scmp.ne.s32.totalorder %s29_s13, %s274_s23  ;;  %p280_p5 = scmp.lt.s32.totalorder %s274_s23, %s274_s23 }
   0xd   :  { %p281_p6 = por %p280_p5, %p279_p4 }
   0xf   :  { %p282_p7 = pnand %p281_p6, %p275_p3 }
  0x11   :  { %285 = shalt.err (!%p282_p7)
}
  0x12   :  { %s348_s24 = smov 128   ;;  %s349_s25 = smov 8  }
  0x13   :  { %34 = dma.hbm_to_vmem [thread:$0]  %s437_s1, 1792, %s29_s13, [#allocation7], %s348_s24, %s348_s24, %s349_s25  }
  0x14   :  { %s286_s30 = scalar_lea.hbm %s436_s0, 1792 }
  0x15   :  { %p287_p8 = scmp.ne.s32.totalorder %s436_s0, %s286_s30  ;;  %p290_p9 = scmp.lt.u32.totalorder %s286_s30, %s436_s0 }
  0x17   :  { %p292_p10 = pnand %p290_p9, %p287_p8 }
  0x19   :  { %295 = shalt.err (!%p292_p10)
}
  0x1a   :  { %s296_s8 = scalar_lea.vmem %s372_s15, 1792  ;;  %p301_p12 = scmp.lt.s32.totalorder %s372_s15, %s372_s15 }
  0x1b   :  { %p297_p11 = scmp.ne.s32.totalorder %s372_s15, %s296_s8  ;;  %p302_p13 = scmp.lt.s32.totalorder %s296_s8, %s296_s8 }
  0x1d   :  { %p303_p0 = por %p302_p13, %p301_p12 }
  0x1f   :  { %p304_p1 = pnand %p303_p0, %p297_p11 }
  0x21   :  { %307 = shalt.err (!%p304_p1)
}
  0x22   :  { %22 = dma.hbm_to_vmem [thread:$0]  %s436_s0, 1792, %s372_s15, [#allocation4], %s348_s24, %s348_s24, %s349_s25  }
  0x23   :  { %s350_s10 = smov [#allocation8]   ;;  %s308_s14 = scalar_lea.hbm %s438_s2, 1792 }
  0x24   :  { %s40_s11 = sshll.u32 %s350_s10, 4  ;;  %p309_p2 = scmp.ne.s32.totalorder %s438_s2, %s308_s14  ;;  %s41_s11 = int_to_ptr.vmem [resolvable:$true] %s40_s11 }
  0x25   :  { %p312_p3 = scmp.lt.u32.totalorder %s308_s14, %s438_s2 }
  0x27   :  { %p314_p4 = pnand %p312_p3, %p309_p2 }
  0x29   :  { %317 = shalt.err (!%p314_p4)
}
  0x2a   :  { %s318_s20 = scalar_lea.vmem %s41_s11, 1792  ;;  %p323_p6 = scmp.lt.s32.totalorder %s41_s11, %s41_s11 }
  0x2b   :  { %p319_p5 = scmp.ne.s32.totalorder %s41_s11, %s318_s20  ;;  %p324_p7 = scmp.lt.s32.totalorder %s318_s20, %s318_s20 }
  0x2d   :  { %p325_p8 = por %p324_p7, %p323_p6 }
  0x2f   :  { %p326_p9 = pnand %p325_p8, %p319_p5 }
  0x31   :  { %329 = shalt.err (!%p326_p9)
}
  0x32   :  { %46 = dma.hbm_to_vmem [thread:$0]  %s438_s2, 1792, %s41_s11, [#allocation7], %s348_s24, %s348_s24, %s349_s25  }
  0x33   :  { %340 = dma.done.wait [#allocation4], 1792  }
  0x34   :  { %341 = vsyncadd [#allocation4], 4294965504 }
  0x35   :  { %342 = dma.done.wait [#allocation7], 3584  }
  0x36   :  { %343 = vsyncadd [#allocation7], 4294963712  ;;  %v74_v0 = vld [vmem:[#allocation3] sm:$0xff]  ;;  %v75_v1 = vld [vmem:[#allocation3 + $0x8] sm:$0xff]  ;;  %s330_s23 = scalar_lea.hbm %s439_s3, 16 }
  0x37   :  { %v76_v2 = vld [vmem:[#allocation3 + $0x10] sm:$0xff]  ;;  %v77_v3 = vld [vmem:[#allocation3 + $0x18] sm:$0xff]  ;;  %v90_v6 = vld [vmem:[#allocation6 + $0x10] sm:$0xff]  ;;  %p331_p10 = scmp.ne.s32.totalorder %s439_s3, %s330_s23  ;;  %p334_p11 = scmp.lt.u32.totalorder %s330_s23, %s439_s3 }
  0x38   :  { %v88_v4 = vld [vmem:[#allocation6] sm:$0xff]  ;;  %v89_v5 = vld [vmem:[#allocation6 + $0x8] sm:$0xff]  ;;  %v91_v7 = vld [vmem:[#allocation6 + $0x18] sm:$0xff]  ;;  %v104_v10 = vsub.f32 %v76_v2, %v90_v6 }
  0x39   :  { %v102_v8 = vsub.f32 %v74_v0, %v88_v4  ;;  %v103_v9 = vsub.f32 %v75_v1, %v89_v5  ;;  %v78_v11 = vld [vmem:[#allocation3 + $0x20] sm:$0xff]  ;;  %v92_v12 = vld [vmem:[#allocation6 + $0x20] sm:$0xff]  ;;  %v105_v13 = vsub.f32 %v77_v3, %v91_v7  ;;  %v79_v14 = vld [vmem:[#allocation3 + $0x28] sm:$0xff]  ;;  %p336_p12 = pnand %p334_p11, %p331_p10 }
  0x3a   :  { %v93_v15 = vld [vmem:[#allocation6 + $0x28] sm:$0xff]  ;;  %v106_v18 = vsub.f32 %v78_v11, %v92_v12  ;;  %v118_v19 = vmul.f32 %v104_v10, %v104_v10  ;;  %v189_v20 = vld [vmem:[#allocation8] sm:$0xff]  ;;  %v190_v21 = vld [vmem:[#allocation8 + $0x8] sm:$0xff] }
  0x3b   :  { %v116_v16 = vmul.f32 %v102_v8, %v102_v8  ;;  %v117_v17 = vmul.f32 %v103_v9, %v103_v9  ;;  %v80_v22 = vld [vmem:[#allocation3 + $0x30] sm:$0xff]  ;;  %v94_v23 = vld [vmem:[#allocation6 + $0x30] sm:$0xff]  ;;  %v107_v25 = vsub.f32 %v79_v14, %v93_v15  ;;  %v119_v26 = vmul.f32 %v105_v13, %v105_v13  ;;  %v81_v27 = vld [vmem:[#allocation3 + $0x38] sm:$0xff] }
  0x3c   :  { %v191_v24 = vld [vmem:[#allocation8 + $0x10] sm:$0xff]  ;;  %v95_v28 = vld [vmem:[#allocation6 + $0x38] sm:$0xff]  ;;  %v192_v29 = vld [vmem:[#allocation8 + $0x18] sm:$0xff]  ;;  %v108_v32 = vsub.f32 %v80_v22, %v94_v23  ;;  %v120_v33 = vmul.f32 %v106_v18, %v106_v18 }
  0x3d   :  { %v203_v30 = vmul.f32 %v189_v20, %v116_v16  ;;  %v204_v31 = vmul.f32 %v190_v21, %v117_v17  ;;  %v205_v34 = vmul.f32 %v191_v24, %v118_v19  ;;  %v82_v35 = vld [vmem:[#allocation3 + $0x40] sm:$0xff]  ;;  %v96_v36 = vld [vmem:[#allocation6 + $0x40] sm:$0xff]  ;;  %v109_v38 = vsub.f32 %v81_v27, %v95_v28  ;;  %v83_v42 = vld [vmem:[#allocation3 + $0x48] sm:$0xff] }
  0x3e   :  { %v193_v37 = vld [vmem:[#allocation8 + $0x20] sm:$0xff]  ;;  %v121_v39 = vmul.f32 %v107_v25, %v107_v25  ;;  %v206_v40 = vmul.f32 %v192_v29, %v119_v26  ;;  %v97_v43 = vld [vmem:[#allocation6 + $0x48] sm:$0xff]  ;;  %v194_v44 = vld [vmem:[#allocation8 + $0x28] sm:$0xff]  ;;  %v110_v45 = vsub.f32 %v82_v35, %v96_v36  ;;  %v122_v46 = vmul.f32 %v108_v32, %v108_v32 }
  0x3f   :  { %v217_v41 = vadd.f32 %v204_v31, %v203_v30  ;;  %v207_v47 = vmul.f32 %v193_v37, %v120_v33  ;;  %v84_v49 = vld [vmem:[#allocation3 + $0x50] sm:$0xff]  ;;  %v98_v50 = vld [vmem:[#allocation6 + $0x50] sm:$0xff]  ;;  %v111_v52 = vsub.f32 %v83_v42, %v97_v43  ;;  %v123_v53 = vmul.f32 %v109_v38, %v109_v38  ;;  %v85_v56 = vld [vmem:[#allocation3 + $0x58] sm:$0xff] }
  0x40   :  { %v195_v51 = vld [vmem:[#allocation8 + $0x30] sm:$0xff]  ;;  %v208_v54 = vmul.f32 %v194_v44, %v121_v39  ;;  %v99_v57 = vld [vmem:[#allocation6 + $0x58] sm:$0xff]  ;;  %v196_v58 = vld [vmem:[#allocation8 + $0x38] sm:$0xff]  ;;  %v112_v59 = vsub.f32 %v84_v49, %v98_v50  ;;  %v124_v60 = vmul.f32 %v110_v45, %v110_v45 }
  0x41   :  { %v218_v48 = vadd.f32 %v217_v41, %v205_v34  ;;  %v209_v61 = vmul.f32 %v195_v51, %v122_v46  ;;  %v86_v63 = vld [vmem:[#allocation3 + $0x60] sm:$0xff]  ;;  %v100_v0 = vld [vmem:[#allocation6 + $0x60] sm:$0xff]  ;;  %v113_v2 = vsub.f32 %v85_v56, %v99_v57  ;;  %v125_v3 = vmul.f32 %v111_v52, %v111_v52  ;;  %v87_v6 = vld [vmem:[#allocation3 + $0x68] sm:$0xff] }
  0x42   :  { %v197_v1 = vld [vmem:[#allocation8 + $0x40] sm:$0xff]  ;;  %v210_v4 = vmul.f32 %v196_v58, %v123_v53  ;;  %v101_v7 = vld [vmem:[#allocation6 + $0x68] sm:$0xff]  ;;  %v198_v8 = vld [vmem:[#allocation8 + $0x48] sm:$0xff]  ;;  %v114_v9 = vsub.f32 %v86_v63, %v100_v0  ;;  %v126_v10 = vmul.f32 %v112_v59, %v112_v59 }
  0x43   :  { %v219_v55 = vadd.f32 %v218_v48, %v206_v40  ;;  %v211_v11 = vmul.f32 %v197_v1, %v124_v60  ;;  %v199_v13 = vld [vmem:[#allocation8 + $0x50] sm:$0xff]  ;;  %v115_v14 = vsub.f32 %v87_v6, %v101_v7  ;;  %v127_v15 = vmul.f32 %v113_v2, %v113_v2  ;;  %v200_v18 = vld [vmem:[#allocation8 + $0x58] sm:$0xff]  ;;  %v201_v22 = vld [vmem:[#allocation8 + $0x60] sm:$0xff] }
  0x44   :  { %v212_v16 = vmul.f32 %v198_v8, %v125_v3  ;;  %v128_v19 = vmul.f32 %v114_v9, %v114_v9  ;;  %v213_v20 = vmul.f32 %v199_v13, %v126_v10  ;;  %v202_v26 = vld [vmem:[#allocation8 + $0x68] sm:$0xff] }
  0x45   :  { %v220_v62 = vadd.f32 %v219_v55, %v207_v47  ;;  %v129_v23 = vmul.f32 %v115_v14, %v115_v14  ;;  %v214_v24 = vmul.f32 %v200_v18, %v127_v15 }
  0x46   :  { %v215_v27 = vmul.f32 %v201_v22, %v128_v19 }
  0x47   :  { %v221_v5 = vadd.f32 %v220_v62, %v208_v54  ;;  %v216_v29 = vmul.f32 %v202_v26, %v129_v23 }
  0x49   :  { %v222_v12 = vadd.f32 %v221_v5, %v209_v61 }
  0x4b   :  { %v223_v17 = vadd.f32 %v222_v12, %v210_v4 }
  0x4d   :  { %v224_v21 = vadd.f32 %v223_v17, %v211_v11 }
  0x4f   :  { %v225_v25 = vadd.f32 %v224_v21, %v212_v16 }
  0x51   :  { %v226_v28 = vadd.f32 %v225_v25, %v213_v20 }
  0x53   :  { %v227_v30 = vadd.f32 %v226_v28, %v214_v24 }
  0x55   :  { %v228_v31 = vadd.f32 %v227_v30, %v215_v27 }
  0x57   :  { %v229_v32 = vadd.f32 %v228_v31, %v216_v29 }
  0x59   :  { %230 = vadd.xlane.f32.xlu0 %v229_v32 }
  0xe6   :  { %v231_v33 = vpop.xlane.xlu0 %230 }
  0xe7   :  { %v232_v34 = vrot.slane %v231_v33, 4 }
  0xe9   :  { %v233_v35 = vadd.f32 %v232_v34, %v231_v33 }
  0xeb   :  { %v234_v36 = vrot.slane %v233_v35, 2 }
  0xed   :  { %v235_v37 = vadd.f32 %v234_v36, %v233_v35 }
  0xef   :  { %v236_v38 = vrot.slane %v235_v37, 1 }
  0xf1   :  { %v237_v39 = vadd.f32 %v236_v38, %v235_v37 }
  0xf3   :  { %256 = vpush %v237_v39 }
 0x124   :  { %s257_s2 = spop %256 }
 0x125   :  { %240 = sst [smem:[#allocation9]] %s257_s2 }
 0x126   :  { %339 = shalt.err (!%p336_p12)
}
 0x127   :  { %s351_s28 = smov [#allocation9]  }
 0x128   :  { %248 = dma.smem_to_hbm %s351_s28, 16, %s439_s3, [#allocation5]  }
 0x129   :  { %344 = dma.done.wait [#allocation5], 16  }
 0x12a   :  { %345 = vsyncadd [#allocation5], 4294967280 }
 0x12b   :  { %252 = sfence }
 0x12c   :  { %253 = vsyncpa [#allocation4], 1 }
 0x12d   :  { %254 = vsyncpa [#allocation7], 1 }
 0x12e   :  { %255 = vsyncpa [#allocation5], 1 }

</bundles_post_ra>
